<compile_context>
chip_gen: v7x
topology: tpu7x:2x2x1
jax: 0.10.0
libtpu: 0.0.40
codegen_flags: <defaults>
</compile_context>

<pallas_src>
import functools

import jax
import jax.numpy as jnp
from jax.experimental import pallas as pl
from jax.experimental.pallas import tpu as pltpu

LANE = 128          # vreg lane width (last dim)
SUBLANE_PACK = 16   # round batch tiles to 16 rows (bf16 packs 2 rows per sublane)


def _round_up(n, m):
    return ((n + m - 1) // m) * m


def _cdiv(a, b):
    return (a + b - 1) // b


def _qnet_kernel(x_ref, w1_ref, b1_ref, w2_ref, b2_ref, w3_ref, b3_ref,
                 w4_ref, b4_ref, o_ref):
    """One batch tile of the fused 4-layer MLP.

    Matmul operands are in the weights' compute dtype (bf16 or f32) and accumulate
    into f32; bias add / ReLU / final store stay f32.  The whole chain lives in
    vregs — no intermediate VMEM spills.
    """
    cdt = w1_ref.dtype

    h = jnp.dot(x_ref[...], w1_ref[...],
                preferred_element_type=jnp.float32) + b1_ref[...]
    h = jnp.maximum(h, 0.0)

    h = jnp.dot(h.astype(cdt), w2_ref[...],
                preferred_element_type=jnp.float32) + b2_ref[...]
    h = jnp.maximum(h, 0.0)

    h = jnp.dot(h.astype(cdt), w3_ref[...],
                preferred_element_type=jnp.float32) + b3_ref[...]
    h = jnp.maximum(h, 0.0)

    h = jnp.dot(h.astype(cdt), w4_ref[...],
                preferred_element_type=jnp.float32) + b4_ref[...]
    o_ref[...] = h.astype(o_ref.dtype)


@functools.partial(jax.jit, static_argnames=("action_dim",))
def q_net_forward(x, padded_params, *, action_dim):
    """x: (B, state_dim) float32.  padded_params: see pad_params().

    Returns (B, action_dim) float32 matching the PyTorch Q_Net forward.
    """
    w1, b1 = padded_params["w1"], padded_params["b1"]
    w2, b2 = padded_params["w2"], padded_params["b2"]
    w3, b3 = padded_params["w3"], padded_params["b3"]
    w4, b4 = padded_params["w4"], padded_params["b4"]

    B, state_dim = x.shape
    assert w1.shape[0] == state_dim, "w1 first dim must equal state_dim (no K padding)"
    cdt = w1.dtype                       # compute dtype for matmul operands
    d_out_pad = w4.shape[1]              # 128-lane-padded action dim

    # --- batch tiling -------------------------------------------------------
    # Round the batch only to the sublane-pack granule, then use as few tiles as
    # possible: 1 tile for any normal DQN batch; >=2 (so v7x can split across its
    # two TensorCores) only for very large batches.  Per-tile VMEM footprint is
    # tiny (<~2 MiB even at TB=2048), so there is no reason to over-tile.
    b_sub = _round_up(B, SUBLANE_PACK)
    TB_MAX = 2048
    if b_sub <= 1024:
        num_tiles = 1
    else:
        num_tiles = max(2, _cdiv(b_sub, TB_MAX))
    TB = _round_up(_cdiv(b_sub, num_tiles), SUBLANE_PACK)
    b_pad = TB * num_tiles

    # Pad only the batch dim; x keeps its real state_dim lane width and is cast to
    # the matmul dtype (pad + cast fuse into one trivial XLA op).
    x_p = jnp.pad(x, ((0, b_pad - B), (0, 0))).astype(cdt)

    # Weights/biases: constant index_map -> resident in VMEM across all tiles.
    w_spec = lambda a: pl.BlockSpec(a.shape, lambda i: (0, 0))

    out_p = pl.pallas_call(
        _qnet_kernel,
        out_shape=jax.ShapeDtypeStruct((b_pad, d_out_pad), jnp.float32),
        grid=(num_tiles,),
        in_specs=[
            pl.BlockSpec((TB, state_dim), lambda i: (i, 0)),   # activation stream
            w_spec(w1), w_spec(b1),
            w_spec(w2), w_spec(b2),
            w_spec(w3), w_spec(b3),
            w_spec(w4), w_spec(b4),
        ],
        out_specs=pl.BlockSpec((TB, d_out_pad), lambda i: (i, 0)),
        compiler_params=pltpu.CompilerParams(
            dimension_semantics=(("parallel",) if num_tiles > 1 else ("arbitrary",)),
        ),
    )(x_p, w1, b1, w2, b2, w3, b3, w4, b4)

    return out_p[:B, :action_dim]


def init_params(key, state_dim, hidden_dim, action_dim):
    """Deterministic init mirroring nn.Linear's U(-1/sqrt(fan_in), 1/sqrt(fan_in)).

    Weights stored as (in_features, out_features) so y = x @ W + b matches
    PyTorch's x @ W.T + b.
    """
    def linear(k, fan_in, fan_out):
        kw, kb = jax.random.split(k)
        bound = 1.0 / jnp.sqrt(jnp.float32(fan_in))
        w = jax.random.uniform(kw, (fan_in, fan_out), jnp.float32, -bound, bound)
        b = jax.random.uniform(kb, (1, fan_out), jnp.float32, -bound, bound)
        return w, b

    k1, k2, k3, k4 = jax.random.split(key, 4)
    w1, b1 = linear(k1, state_dim, hidden_dim)
    w2, b2 = linear(k2, hidden_dim, hidden_dim)
    w3, b3 = linear(k3, hidden_dim, hidden_dim)
    w4, b4 = linear(k4, hidden_dim, action_dim)
    return {"w1": w1, "b1": b1, "w2": w2, "b2": b2,
            "w3": w3, "b3": b3, "w4": w4, "b4": b4}


def pad_params(params, dtype=jnp.bfloat16):
    """Pad params for the kernel and cast weights to the matmul compute dtype.

    * w1 keeps its true input (K) dim = state_dim (x is not lane-padded); only its
      output dim is zero-padded to a multiple of 128.
    * w2/w3/w4 are zero-padded on both dims to multiples of 128; biases on their
      last dim.  Zero padding is mathematically inert through ReLU and the final
      slice recovers the exact unpadded result.
    * Weights are stored in `dtype` (bf16 by default: native MXU path + half the
      DMA bytes); biases stay f32 because the bias add / ReLU run on the VPU in f32.
    """
    def pad_cols(a):
        r, c = a.shape
        return jnp.pad(a, ((0, 0), (0, _round_up(c, LANE) - c)))

    def pad_both(a):
        r, c = a.shape
        return jnp.pad(a, ((0, _round_up(r, LANE) - r), (0, _round_up(c, LANE) - c)))

    return {
        "w1": pad_cols(params["w1"]).astype(dtype),
        "b1": pad_cols(params["b1"]).astype(jnp.float32),
        "w2": pad_both(params["w2"]).astype(dtype),
        "b2": pad_cols(params["b2"]).astype(jnp.float32),
        "w3": pad_both(params["w3"]).astype(dtype),
        "b3": pad_cols(params["b3"]).astype(jnp.float32),
        "w4": pad_both(params["w4"]).astype(dtype),
        "b4": pad_cols(params["b4"]).astype(jnp.float32),
    }


if __name__ == "__main__":
    # Small shapes consistent with the module: batch=8, state_dim=16, hidden=32, actions=4
    B, state_dim, hidden_dim, action_dim = 8, 16, 32, 4

    key = jax.random.PRNGKey(0)
    kx, kp = jax.random.split(key)
    x = jax.random.normal(kx, (B, state_dim), dtype=jnp.float32)

    params = init_params(kp, state_dim, hidden_dim, action_dim)

    # Pure-JAX reference of the same forward math (unpadded f32 params).
    def ref(xx, p):
        h = jnp.maximum(xx @ p["w1"] + p["b1"], 0.0)
        h = jnp.maximum(h @ p["w2"] + p["b2"], 0.0)
        h = jnp.maximum(h @ p["w3"] + p["b3"], 0.0)
        return h @ p["w4"] + p["b4"]

    expected = ref(x, params)

    # Exact-semantics path (f32 matmul operands) — tight tolerance.
    out_f32 = jax.block_until_ready(
        q_net_forward(x, pad_params(params, dtype=jnp.float32), action_dim=action_dim))
    assert out_f32.shape == (B, action_dim)
    assert jnp.allclose(out_f32, expected, atol=1e-5, rtol=1e-5)

    # Bandwidth-optimized path (bf16 matmul operands, f32 accumulation/bias/ReLU).
    out_bf16 = jax.block_until_ready(
        q_net_forward(x, pad_params(params, dtype=jnp.bfloat16), action_dim=action_dim))
    assert out_bf16.shape == (B, action_dim)
    assert jnp.allclose(out_bf16, expected, atol=5e-2, rtol=5e-2)

    print("KERNEL_OK")
</pallas_src>

<mosaic_0001>
module attributes {stable_mosaic.version = 11 : i64} {
  func.func @_qnet_kernel(%arg0: i32, %arg1: memref<16x16xf32, #tpu.memory_space<vmem>>, %arg2: memref<16x128xf32, #tpu.memory_space<vmem>>, %arg3: memref<1x128xf32, #tpu.memory_space<vmem>>, %arg4: memref<128x128xf32, #tpu.memory_space<vmem>>, %arg5: memref<1x128xf32, #tpu.memory_space<vmem>>, %arg6: memref<128x128xf32, #tpu.memory_space<vmem>>, %arg7: memref<1x128xf32, #tpu.memory_space<vmem>>, %arg8: memref<128x128xf32, #tpu.memory_space<vmem>>, %arg9: memref<1x128xf32, #tpu.memory_space<vmem>>, %arg10: memref<16x128xf32, #tpu.memory_space<vmem>>) attributes {dimension_semantics = [#tpu.dimension_semantics<arbitrary>], iteration_bounds = array<i64: 1>, scalar_prefetch = 0 : i64, scratch_operands = 0 : i64, tpu.core_type = #tpu.core_type<tc>, window_params = [{transform_indices = @transform_0, window_bounds = array<i64: 16, 16>}, {pipeline_mode = #tpu.pipeline_mode<synchronous>, transform_indices = @transform_1, window_bounds = array<i64: 16, 128>}, {pipeline_mode = #tpu.pipeline_mode<synchronous>, transform_indices = @transform_2, window_bounds = array<i64: 1, 128>}, {pipeline_mode = #tpu.pipeline_mode<synchronous>, transform_indices = @transform_3, window_bounds = array<i64: 128, 128>}, {pipeline_mode = #tpu.pipeline_mode<synchronous>, transform_indices = @transform_4, window_bounds = array<i64: 1, 128>}, {pipeline_mode = #tpu.pipeline_mode<synchronous>, transform_indices = @transform_5, window_bounds = array<i64: 128, 128>}, {pipeline_mode = #tpu.pipeline_mode<synchronous>, transform_indices = @transform_6, window_bounds = array<i64: 1, 128>}, {pipeline_mode = #tpu.pipeline_mode<synchronous>, transform_indices = @transform_7, window_bounds = array<i64: 128, 128>}, {pipeline_mode = #tpu.pipeline_mode<synchronous>, transform_indices = @transform_8, window_bounds = array<i64: 1, 128>}, {transform_indices = @transform_9, window_bounds = array<i64: 16, 128>}]} {
    %c0 = arith.constant 0 : index
    %c0_0 = arith.constant 0 : index
    %0 = vector.load %arg1[%c0, %c0_0] : memref<16x16xf32, #tpu.memory_space<vmem>>, vector<16x16xf32>
    %c0_1 = arith.constant 0 : index
    %c0_2 = arith.constant 0 : index
    %1 = vector.load %arg2[%c0_1, %c0_2] : memref<16x128xf32, #tpu.memory_space<vmem>>, vector<16x128xf32>
    %cst = arith.constant dense<0.000000e+00> : vector<16x128xf32>
    %2 = tpu.matmul %0, %1, %cst {dimension_numbers = #tpu.dot_dimension_numbers<[1], [0], [0], [1], [0, 0, 1, 1], [], []>} : vector<16x16xf32>, vector<16x128xf32>, vector<16x128xf32> -> vector<16x128xf32>
    %c0_3 = arith.constant 0 : index
    %c0_4 = arith.constant 0 : index
    %3 = vector.load %arg3[%c0_3, %c0_4] : memref<1x128xf32, #tpu.memory_space<vmem>>, vector<1x128xf32>
    %4 = vector.broadcast %3 : vector<1x128xf32> to vector<16x128xf32>
    %5 = arith.addf %2, %4 : vector<16x128xf32>
    %cst_5 = arith.constant 0.000000e+00 : f32
    %6 = vector.broadcast %cst_5 : f32 to vector<16x128xf32>
    %7 = arith.maximumf %5, %6 : vector<16x128xf32>
    %c0_6 = arith.constant 0 : index
    %c0_7 = arith.constant 0 : index
    %8 = vector.load %arg4[%c0_6, %c0_7] : memref<128x128xf32, #tpu.memory_space<vmem>>, vector<128x128xf32>
    %cst_8 = arith.constant dense<0.000000e+00> : vector<16x128xf32>
    %9 = tpu.matmul %7, %8, %cst_8 {dimension_numbers = #tpu.dot_dimension_numbers<[1], [0], [0], [1], [0, 0, 1, 1], [], []>} : vector<16x128xf32>, vector<128x128xf32>, vector<16x128xf32> -> vector<16x128xf32>
    %c0_9 = arith.constant 0 : index
    %c0_10 = arith.constant 0 : index
    %10 = vector.load %arg5[%c0_9, %c0_10] : memref<1x128xf32, #tpu.memory_space<vmem>>, vector<1x128xf32>
    %11 = vector.broadcast %10 : vector<1x128xf32> to vector<16x128xf32>
    %12 = arith.addf %9, %11 : vector<16x128xf32>
    %cst_11 = arith.constant 0.000000e+00 : f32
    %13 = vector.broadcast %cst_11 : f32 to vector<16x128xf32>
    %14 = arith.maximumf %12, %13 : vector<16x128xf32>
    %c0_12 = arith.constant 0 : index
    %c0_13 = arith.constant 0 : index
    %15 = vector.load %arg6[%c0_12, %c0_13] : memref<128x128xf32, #tpu.memory_space<vmem>>, vector<128x128xf32>
    %cst_14 = arith.constant dense<0.000000e+00> : vector<16x128xf32>
    %16 = tpu.matmul %14, %15, %cst_14 {dimension_numbers = #tpu.dot_dimension_numbers<[1], [0], [0], [1], [0, 0, 1, 1], [], []>} : vector<16x128xf32>, vector<128x128xf32>, vector<16x128xf32> -> vector<16x128xf32>
    %c0_15 = arith.constant 0 : index
    %c0_16 = arith.constant 0 : index
    %17 = vector.load %arg7[%c0_15, %c0_16] : memref<1x128xf32, #tpu.memory_space<vmem>>, vector<1x128xf32>
    %18 = vector.broadcast %17 : vector<1x128xf32> to vector<16x128xf32>
    %19 = arith.addf %16, %18 : vector<16x128xf32>
    %cst_17 = arith.constant 0.000000e+00 : f32
    %20 = vector.broadcast %cst_17 : f32 to vector<16x128xf32>
    %21 = arith.maximumf %19, %20 : vector<16x128xf32>
    %c0_18 = arith.constant 0 : index
    %c0_19 = arith.constant 0 : index
    %22 = vector.load %arg8[%c0_18, %c0_19] : memref<128x128xf32, #tpu.memory_space<vmem>>, vector<128x128xf32>
    %cst_20 = arith.constant dense<0.000000e+00> : vector<16x128xf32>
    %23 = tpu.matmul %21, %22, %cst_20 {dimension_numbers = #tpu.dot_dimension_numbers<[1], [0], [0], [1], [0, 0, 1, 1], [], []>} : vector<16x128xf32>, vector<128x128xf32>, vector<16x128xf32> -> vector<16x128xf32>
    %c0_21 = arith.constant 0 : index
    %c0_22 = arith.constant 0 : index
    %24 = vector.load %arg9[%c0_21, %c0_22] : memref<1x128xf32, #tpu.memory_space<vmem>>, vector<1x128xf32>
    %25 = vector.broadcast %24 : vector<1x128xf32> to vector<16x128xf32>
    %26 = arith.addf %23, %25 : vector<16x128xf32>
    %c0_23 = arith.constant 0 : index
    %c0_24 = arith.constant 0 : index
    %27 = vector.load %arg10[%c0_23, %c0_24] : memref<16x128xf32, #tpu.memory_space<vmem>>, vector<16x128xf32>
    tpu.vector_store %arg10[%c0_23, %c0_24], %26 {strides = array<i32>} : memref<16x128xf32, #tpu.memory_space<vmem>>, vector<16x128xf32>,
    return
  }
  func.func @transform_0(%arg0: i32) -> (i32, i32) {
    %c0_i32 = arith.constant 0 : i32
    %c0_i32_0 = arith.constant 0 : i32
    return %arg0, %c0_i32 : i32, i32
  }
  func.func @transform_1(%arg0: i32) -> (i32, i32) {
    %c0_i32 = arith.constant 0 : i32
    %c0_i32_0 = arith.constant 0 : i32
    %c0_i32_1 = arith.constant 0 : i32
    return %c0_i32, %c0_i32_0 : i32, i32
  }
  func.func @transform_2(%arg0: i32) -> (i32, i32) {
    %c0_i32 = arith.constant 0 : i32
    %c0_i32_0 = arith.constant 0 : i32
    %c0_i32_1 = arith.constant 0 : i32
    return %c0_i32, %c0_i32_0 : i32, i32
  }
  func.func @transform_3(%arg0: i32) -> (i32, i32) {
    %c0_i32 = arith.constant 0 : i32
    %c0_i32_0 = arith.constant 0 : i32
    %c0_i32_1 = arith.constant 0 : i32
    return %c0_i32, %c0_i32_0 : i32, i32
  }
  func.func @transform_4(%arg0: i32) -> (i32, i32) {
    %c0_i32 = arith.constant 0 : i32
    %c0_i32_0 = arith.constant 0 : i32
    %c0_i32_1 = arith.constant 0 : i32
    return %c0_i32, %c0_i32_0 : i32, i32
  }
  func.func @transform_5(%arg0: i32) -> (i32, i32) {
    %c0_i32 = arith.constant 0 : i32
    %c0_i32_0 = arith.constant 0 : i32
    %c0_i32_1 = arith.constant 0 : i32
    return %c0_i32, %c0_i32_0 : i32, i32
  }
  func.func @transform_6(%arg0: i32) -> (i32, i32) {
    %c0_i32 = arith.constant 0 : i32
    %c0_i32_0 = arith.constant 0 : i32
    %c0_i32_1 = arith.constant 0 : i32
    return %c0_i32, %c0_i32_0 : i32, i32
  }
  func.func @transform_7(%arg0: i32) -> (i32, i32) {
    %c0_i32 = arith.constant 0 : i32
    %c0_i32_0 = arith.constant 0 : i32
    %c0_i32_1 = arith.constant 0 : i32
    return %c0_i32, %c0_i32_0 : i32, i32
  }
  func.func @transform_8(%arg0: i32) -> (i32, i32) {
    %c0_i32 = arith.constant 0 : i32
    %c0_i32_0 = arith.constant 0 : i32
    %c0_i32_1 = arith.constant 0 : i32
    return %c0_i32, %c0_i32_0 : i32, i32
  }
  func.func @transform_9(%arg0: i32) -> (i32, i32) {
    %c0_i32 = arith.constant 0 : i32
    %c0_i32_0 = arith.constant 0 : i32
    return %arg0, %c0_i32 : i32, i32
  }
}

</mosaic_0001>

<bundles_post_ra>
// kernel: q_net_forward.1
= control target key start
LH: loop header
LB: loop body
LE: loop exit
PB: predicated region body
PF: predicated region fallthrough
CT: control target
= control target key end

     0   :  { %14 = vsyncpa [#allocation3], 0  ;;  %s964_s0 = inlined_call_operand.vmem [shape: f32[16,16], index: 0, kind: input, shape index: {}]   ;;  %s965_s1 = inlined_call_operand.vmem [shape: f32[16,128], index: 1, kind: input, shape index: {}]   ;;  %s966_s2 = inlined_call_operand.vmem [shape: f32[1,128], index: 2, kind: input, shape index: {}]   ;;  %s967_s3 = inlined_call_operand.hbm [shape: f32[128,128], index: 3, kind: input, shape index: {}]   ;;  %s968_s4 = inlined_call_operand.vmem [shape: f32[1,128], index: 4, kind: input, shape index: {}]   ;;  %s969_s5 = inlined_call_operand.hbm [shape: f32[128,128], index: 5, kind: input, shape index: {}]   ;;  %s970_s6 = inlined_call_operand.vmem [shape: f32[1,128], index: 6, kind: input, shape index: {}]   ;;  %s971_s7 = inlined_call_operand.hbm [shape: f32[128,128], index: 7, kind: input, shape index: {}]   ;;  %s972_s8 = inlined_call_operand.vmem [shape: f32[1,128], index: 8, kind: input, shape index: {}]   ;;  %s973_s9 = inlined_call_operand.vmem [shape: f32[16,128], index: 9, kind: output, shape index: {}]  }
   0x1   :  { %15 = vsyncpa [#allocation5], 0  ;;  %s825_s30 = smov [#allocation4]   ;;  %s826_s11 = smov [#allocation2]  }
   0x2   :  { %s41_s10 = sshll.u32 %s825_s30, 4  ;;  %s27_s12 = sshll.u32 %s826_s11, 4  ;;  %s42_s10 = int_to_ptr.vmem [resolvable:$true] %s41_s10  ;;  %s880_s12 = int_to_ptr.vmem [resolvable:$true] %s27_s12 }
   0x3   :  { %s755_s15 = scalar_lea.hbm %s969_s5, 2048 }
   0x4   :  { %p756_p0 = scmp.ne.s32.totalorder %s969_s5, %s755_s15  ;;  %p759_p1 = scmp.lt.u32.totalorder %s755_s15, %s969_s5 }
   0x6   :  { %p761_p2 = pnand %p759_p1, %p756_p0 }
   0x8   :  { %764 = shalt.err (!%p761_p2)
}
   0x9   :  { %s765_s20 = scalar_lea.vmem %s42_s10, 2048  ;;  %p770_p4 = scmp.lt.s32.totalorder %s42_s10, %s42_s10 }
   0xa   :  { %p766_p3 = scmp.ne.s32.totalorder %s42_s10, %s765_s20  ;;  %p771_p5 = scmp.lt.s32.totalorder %s765_s20, %s765_s20 }
   0xc   :  { %p772_p6 = por %p771_p5, %p770_p4 }
   0xe   :  { %p773_p7 = pnand %p772_p6, %p766_p3 }
  0x10   :  { %776 = shalt.err (!%p773_p7)
}
  0x11   :  { %s827_s21 = smov 128   ;;  %s828_s22 = smov 8  }
  0x12   :  { %47 = dma.hbm_to_vmem [thread:$0]  %s969_s5, 2048, %s42_s10, [#allocation5], %s827_s21, %s827_s21, %s828_s22  }
  0x13   :  { %s777_s27 = scalar_lea.hbm %s967_s3, 2048 }
  0x14   :  { %p778_p8 = scmp.ne.s32.totalorder %s967_s3, %s777_s27  ;;  %p781_p9 = scmp.lt.u32.totalorder %s777_s27, %s967_s3 }
  0x16   :  { %p783_p10 = pnand %p781_p9, %p778_p8 }
  0x18   :  { %786 = shalt.err (!%p783_p10)
}
  0x19   :  { %s787_s13 = scalar_lea.vmem %s880_s12, 2048  ;;  %p792_p12 = scmp.lt.s32.totalorder %s880_s12, %s880_s12 }
  0x1a   :  { %p788_p11 = scmp.ne.s32.totalorder %s880_s12, %s787_s13  ;;  %p793_p13 = scmp.lt.s32.totalorder %s787_s13, %s787_s13 }
  0x1c   :  { %p794_p0 = por %p793_p13, %p792_p12 }
  0x1e   :  { %p795_p1 = pnand %p794_p0, %p788_p11 }
  0x20   :  { %798 = shalt.err (!%p795_p1)
}
  0x21   :  { %33 = dma.hbm_to_vmem [thread:$0]  %s967_s3, 2048, %s880_s12, [#allocation3], %s827_s21, %s827_s21, %s828_s22  }
  0x22   :  { %s829_s14 = smov [#allocation6]   ;;  %s799_s18 = scalar_lea.hbm %s971_s7, 2048 }
  0x23   :  { %s55_s15 = sshll.u32 %s829_s14, 4  ;;  %p800_p2 = scmp.ne.s32.totalorder %s971_s7, %s799_s18  ;;  %s56_s15 = int_to_ptr.vmem [resolvable:$true] %s55_s15 }
  0x24   :  { %p803_p3 = scmp.lt.u32.totalorder %s799_s18, %s971_s7 }
  0x26   :  { %p805_p4 = pnand %p803_p3, %p800_p2 }
  0x28   :  { %808 = shalt.err (!%p805_p4)
}
  0x29   :  { %s809_s25 = scalar_lea.vmem %s56_s15, 2048  ;;  %p814_p6 = scmp.lt.s32.totalorder %s56_s15, %s56_s15 }
  0x2a   :  { %p810_p5 = scmp.ne.s32.totalorder %s56_s15, %s809_s25  ;;  %p815_p7 = scmp.lt.s32.totalorder %s809_s25, %s809_s25 }
  0x2c   :  { %p816_p8 = por %p815_p7, %p814_p6 }
  0x2e   :  { %p817_p9 = pnand %p816_p8, %p810_p5 }
  0x30   :  { %820 = shalt.err (!%p817_p9)
}
  0x31   :  { %61 = dma.hbm_to_vmem [thread:$0]  %s971_s7, 2048, %s56_s15, [#allocation5], %s827_s21, %s827_s21, %s828_s22  }
  0x32   :  { %821 = dma.done.wait [#allocation3], 2048  }
  0x33   :  { %822 = vsyncadd [#allocation3], 4294965248 }
  0x34   :  { %823 = dma.done.wait [#allocation5], 4096  }
  0x35   :  { %824 = vsyncadd [#allocation5], 4294963200  ;;  %vm84_vm0 = vcmask 130048   ;;  %v75_v0 = vld [vmem:[%s965_s1] sm:$0xff]  ;;  %v76_v1 = vld [vmem:[%s965_s1 + $0x8] sm:$0xff] }
  0x36   :  { %v73_v2 = vld [vmem:[%s964_s0] sm:$0xff]  ;;  %v650_v3 = vpack.c.bf16 %v76_v1, %v75_v0  ;;  %v168_v4 = vld [vmem:[#allocation2] sm:$0xff]  ;;  %v169_v5 = vld [vmem:[#allocation2 + $0x8] sm:$0xff] }
  0x37   :  { %542 = vmatprep.mubr.msk.f32.mxu0 %vm84_vm0, %v73_v2  ;;  %v654_v6 = vpack.c.bf16 %v169_v5, %v168_v4  ;;  %v170_v7 = vld [vmem:[#allocation2 + $0x10] sm:$0xff]  ;;  %v171_v8 = vld [vmem:[#allocation2 + $0x18] sm:$0xff]  ;;  %v172_v10 = vld [vmem:[#allocation2 + $0x20] sm:$0xff] }
  0x38   :  { %651 = vmatprep.subr.bf16.mxu0 %v650_v3  ;;  %v658_v9 = vpack.c.bf16 %v171_v8, %v170_v7  ;;  %v173_v11 = vld [vmem:[#allocation2 + $0x28] sm:$0xff]  ;;  %v74_v12 = vld [vmem:[%s964_s0 + $0x8] sm:$0xff]  ;;  %v174_v14 = vld [vmem:[#allocation2 + $0x30] sm:$0xff] }
  0x39   :  { %653 = vmatpush3.bf16.msra.mxu0 %v650_v3  ;;  %655 = vmatprep.subr.bf16.mxu1 %v654_v6  ;;  %v662_v13 = vpack.c.bf16 %v173_v11, %v172_v10  ;;  %v175_v15 = vld [vmem:[#allocation2 + $0x38] sm:$0xff]  ;;  %v176_v17 = vld [vmem:[#allocation2 + $0x40] sm:$0xff]  ;;  %v177_v18 = vld [vmem:[#allocation2 + $0x48] sm:$0xff] }
  0x3a   :  { %657 = vmatpush3.bf16.msra.mxu1 %v654_v6  ;;  %v666_v16 = vpack.c.bf16 %v175_v15, %v174_v14  ;;  %v670_v19 = vpack.c.bf16 %v177_v18, %v176_v17  ;;  %v178_v20 = vld [vmem:[#allocation2 + $0x50] sm:$0xff]  ;;  %v179_v21 = vld [vmem:[#allocation2 + $0x58] sm:$0xff]  ;;  %v180_v23 = vld [vmem:[#allocation2 + $0x60] sm:$0xff] }
  0x3b   :  { %659 = vmatprep.subr.bf16.mxu1 %v658_v9  ;;  %v674_v22 = vpack.c.bf16 %v179_v21, %v178_v20  ;;  %v181_v24 = vld [vmem:[#allocation2 + $0x68] sm:$0xff]  ;;  %v182_v26 = vld [vmem:[#allocation2 + $0x70] sm:$0xff]  ;;  %v183_v27 = vld [vmem:[#allocation2 + $0x78] sm:$0xff] }
  0x3c   :  { %543 = vmatmul.mubr.msk.f32.vlgmr.msra.gmra.mrb[0].mxu0 %vm84_vm0, %v74_v12  ;;  %v678_v25 = vpack.c.bf16 %v181_v24, %v180_v23  ;;  %v682_v28 = vpack.c.bf16 %v183_v27, %v182_v26  ;;  %v268_v29 = vld [vmem:[#allocation4] sm:$0xff]  ;;  %v269_v30 = vld [vmem:[#allocation4 + $0x8] sm:$0xff]  ;;  %v270_v31 = vld [vmem:[#allocation4 + $0x10] sm:$0xff] }
  0x3d   :  { %v686_v32 = vpack.c.bf16 %v269_v30, %v268_v29  ;;  %v271_v33 = vld [vmem:[#allocation4 + $0x18] sm:$0xff]  ;;  %v272_v35 = vld [vmem:[#allocation4 + $0x20] sm:$0xff]  ;;  %v273_v36 = vld [vmem:[#allocation4 + $0x28] sm:$0xff] }
  0x3e   :  { %661 = vmatpush3.bf16.msra.mxu1 %v658_v9  ;;  %v690_v34 = vpack.c.bf16 %v271_v33, %v270_v31  ;;  %v694_v37 = vpack.c.bf16 %v273_v36, %v272_v35  ;;  %v274_v38 = vld [vmem:[#allocation4 + $0x30] sm:$0xff]  ;;  %v275_v39 = vld [vmem:[#allocation4 + $0x38] sm:$0xff]  ;;  %v276_v41 = vld [vmem:[#allocation4 + $0x40] sm:$0xff] }
  0x3f   :  { %663 = vmatprep.subr.bf16.mxu1 %v662_v13  ;;  %687 = vmatprep.subr.bf16.mxu0 %v686_v32  ;;  %v698_v40 = vpack.c.bf16 %v275_v39, %v274_v38  ;;  %v277_v42 = vld [vmem:[#allocation4 + $0x48] sm:$0xff]  ;;  %v278_v44 = vld [vmem:[#allocation4 + $0x50] sm:$0xff]  ;;  %v279_v45 = vld [vmem:[#allocation4 + $0x58] sm:$0xff] }
  0x40   :  { %689 = vmatpush3.bf16.msra.mxu0 %v686_v32  ;;  %v702_v43 = vpack.c.bf16 %v277_v42, %v276_v41  ;;  %v706_v46 = vpack.c.bf16 %v279_v45, %v278_v44  ;;  %v280_v47 = vld [vmem:[#allocation4 + $0x60] sm:$0xff]  ;;  %v281_v48 = vld [vmem:[#allocation4 + $0x68] sm:$0xff]  ;;  %v474_v50 = vld [vmem:[%s966_s2] ss:$0 sm:$0xff] }
  0x41   :  { %691 = vmatprep.subr.bf16.mxu0 %v690_v34  ;;  %v710_v49 = vpack.c.bf16 %v281_v48, %v280_v47  ;;  %v282_v57 = vld [vmem:[#allocation4 + $0x70] sm:$0xff]  ;;  %v283_v58 = vld [vmem:[#allocation4 + $0x78] sm:$0xff]  ;;  %v368_v60 = vld [vmem:[#allocation6] sm:$0xff] }
  0x42   :  { %665 = vmatpush3.bf16.msra.mxu1 %v662_v13  ;;  %v714_v59 = vpack.c.bf16 %v283_v58, %v282_v57  ;;  %v369_v61 = vld [vmem:[#allocation6 + $0x8] sm:$0xff]  ;;  %v370_v62 = vld [vmem:[#allocation6 + $0x10] sm:$0xff]  ;;  %v371_v0 = vld [vmem:[#allocation6 + $0x18] sm:$0xff] }
  0x43   :  { %667 = vmatprep.subr.bf16.mxu1 %v666_v16  ;;  %v718_v63 = vpack.c.bf16 %v369_v61, %v368_v60  ;;  %v722_v1 = vpack.c.bf16 %v371_v0, %v370_v62  ;;  %v372_v2 = vld [vmem:[#allocation6 + $0x20] sm:$0xff]  ;;  %v373_v3 = vld [vmem:[#allocation6 + $0x28] sm:$0xff]  ;;  %v374_v5 = vld [vmem:[#allocation6 + $0x30] sm:$0xff] }
  0x44   :  { %693 = vmatpush3.bf16.msra.mxu0 %v690_v34  ;;  %v726_v4 = vpack.c.bf16 %v373_v3, %v372_v2  ;;  %v375_v6 = vld [vmem:[#allocation6 + $0x38] sm:$0xff]  ;;  %v376_v8 = vld [vmem:[#allocation6 + $0x40] sm:$0xff]  ;;  %v377_v9 = vld [vmem:[#allocation6 + $0x48] sm:$0xff] }
  0x45   :  { %695 = vmatprep.subr.bf16.mxu0 %v694_v37  ;;  %v730_v7 = vpack.c.bf16 %v375_v6, %v374_v5  ;;  %v734_v10 = vpack.c.bf16 %v377_v9, %v376_v8  ;;  %v378_v11 = vld [vmem:[#allocation6 + $0x50] sm:$0xff]  ;;  %v379_v12 = vld [vmem:[#allocation6 + $0x58] sm:$0xff]  ;;  %v380_v14 = vld [vmem:[#allocation6 + $0x60] sm:$0xff] }
  0x46   :  { %669 = vmatpush3.bf16.msra.mxu1 %v666_v16  ;;  %v738_v13 = vpack.c.bf16 %v379_v12, %v378_v11  ;;  %v381_v15 = vld [vmem:[#allocation6 + $0x68] sm:$0xff]  ;;  %v477_v17 = vld [vmem:[%s968_s4] ss:$0 sm:$0xff] }
  0x47   :  { %671 = vmatprep.subr.bf16.mxu1 %v670_v19  ;;  %v742_v16 = vpack.c.bf16 %v381_v15, %v380_v14  ;;  %v382_v24 = vld [vmem:[#allocation6 + $0x70] sm:$0xff] }
  0x48   :  { %697 = vmatpush3.bf16.msra.mxu0 %v694_v37  ;;  %v478_v27 = vld [vmem:[%s970_s6] ss:$0 sm:$0xff] }
  0x49   :  { %699 = vmatprep.subr.bf16.mxu0 %v698_v40  ;;  %v479_v34 = vld [vmem:[%s972_s8] ss:$0 sm:$0xff] }
  0x4a   :  { %673 = vmatpush3.bf16.msra.mxu1 %v670_v19 }
  0x4b   :  { %675 = vmatprep.subr.bf16.mxu1 %v674_v22 }
  0x4c   :  { %701 = vmatpush3.bf16.msra.mxu0 %v698_v40 }
  0x4d   :  { %703 = vmatprep.subr.bf16.mxu0 %v702_v43 }
  0x4e   :  { %677 = vmatpush3.bf16.msra.mxu1 %v674_v22 }
  0x4f   :  { %679 = vmatprep.subr.bf16.mxu1 %v678_v25 }
  0x50   :  { %705 = vmatpush3.bf16.msra.mxu0 %v702_v43 }
  0x51   :  { %707 = vmatprep.subr.bf16.mxu0 %v706_v46 }
  0x52   :  { %681 = vmatpush3.bf16.msra.mxu1 %v678_v25  ;;  %v383_v25 = vld [vmem:[#allocation6 + $0x78] sm:$0xff] }
  0x53   :  { %683 = vmatprep.subr.bf16.mxu1 %v682_v28  ;;  %v746_v26 = vpack.c.bf16 %v383_v25, %v382_v24 }
  0x54   :  { %709 = vmatpush3.bf16.msra.mxu0 %v706_v46 }
  0x55   :  { %711 = vmatprep.subr.bf16.mxu0 %v710_v49 }
  0x56   :  { %685 = vmatpush3.bf16.msra.mxu1 %v682_v28 }
  0x57   :  { %719 = vmatprep.subr.bf16.mxu1 %v718_v63 }
  0x58   :  { %713 = vmatpush3.bf16.msra.mxu0 %v710_v49 }
  0x59   :  { %715 = vmatprep.subr.bf16.mxu0 %v714_v59 }
  0x5c   :  { %717 = vmatpush3.bf16.msra.mxu0 %v714_v59 }
 0x10f   :  { %v544_v51 = vpop.f32.mrb[0].mxu0 }
 0x110   :  { %v163_v52 = vadd.f32 %v544_v51, %v474_v50  ;;  %v157_v53 = vpop.f32.mrb[1].mxu0 }
 0x111   :  { %v158_v54 = vadd.f32 %v474_v50, %v157_v53 }
 0x112   :  { %v167_v56 = vmax.f32 %v163_v52, 0.0 }
 0x113   :  { %v166_v55 = vmax.f32 %v158_v54, 0.0 }
 0x115   :  { %577 = vmatprep.mubr.f32.mxu1 %v166_v55 }
 0x116   :  { %578 = vmatmul.mubr.f32.vlgmr.msra.gmra.mrb[0].mxu1 %v167_v56 }
 0x117   :  { %721 = vmatpush3.bf16.msra.mxu1 %v718_v63 }
 0x118   :  { %723 = vmatprep.subr.bf16.mxu1 %v722_v1 }
 0x11b   :  { %725 = vmatpush3.bf16.msra.mxu1 %v722_v1 }
 0x11c   :  { %727 = vmatprep.subr.bf16.mxu1 %v726_v4 }
 0x11f   :  { %729 = vmatpush3.bf16.msra.mxu1 %v726_v4 }
 0x120   :  { %731 = vmatprep.subr.bf16.mxu1 %v730_v7 }
 0x123   :  { %733 = vmatpush3.bf16.msra.mxu1 %v730_v7 }
 0x124   :  { %735 = vmatprep.subr.bf16.mxu1 %v734_v10 }
 0x127   :  { %737 = vmatpush3.bf16.msra.mxu1 %v734_v10 }
 0x128   :  { %739 = vmatprep.subr.bf16.mxu1 %v738_v13 }
 0x12b   :  { %741 = vmatpush3.bf16.msra.mxu1 %v738_v13 }
 0x12c   :  { %743 = vmatprep.subr.bf16.mxu1 %v742_v16 }
 0x12f   :  { %745 = vmatpush3.bf16.msra.mxu1 %v742_v16 }
 0x130   :  { %747 = vmatprep.subr.bf16.mxu1 %v746_v26 }
 0x133   :  { %749 = vmatpush3.bf16.msra.mxu1 %v746_v26 }
 0x1e9   :  { %v579_v18 = vpop.f32.mrb[0].mxu1 }
 0x1ea   :  { %v263_v19 = vadd.f32 %v579_v18, %v477_v17  ;;  %v257_v20 = vpop.f32.mrb[1].mxu1 }
 0x1eb   :  { %v258_v21 = vadd.f32 %v477_v17, %v257_v20 }
 0x1ec   :  { %v267_v23 = vmax.f32 %v263_v19, 0.0 }
 0x1ed   :  { %v266_v22 = vmax.f32 %v258_v21, 0.0 }
 0x1ef   :  { %612 = vmatprep.mubr.f32.mxu0 %v266_v22 }
 0x1f0   :  { %613 = vmatmul.mubr.f32.vlgmr.msra.gmra.mrb[2].mxu0 %v267_v23 }
 0x2c3   :  { %v614_v28 = vpop.f32.mrb[2].mxu0 }
 0x2c4   :  { %v363_v29 = vadd.f32 %v614_v28, %v478_v27  ;;  %v357_v30 = vpop.f32.mrb[3].mxu0 }
 0x2c5   :  { %v358_v31 = vadd.f32 %v478_v27, %v357_v30 }
 0x2c6   :  { %v367_v33 = vmax.f32 %v363_v29, 0.0 }
 0x2c7   :  { %v366_v32 = vmax.f32 %v358_v31, 0.0 }
 0x2c9   :  { %647 = vmatprep.mubr.f32.mxu1 %v366_v32 }
 0x2ca   :  { %648 = vmatmul.mubr.f32.vlgmr.msra.gmra.mrb[2].mxu1 %v367_v33 }
 0x39d   :  { %v649_v35 = vpop.f32.mrb[2].mxu1 }
 0x39e   :  { %v463_v36 = vadd.f32 %v649_v35, %v479_v34  ;;  %v457_v37 = vpop.f32.mrb[3].mxu1 }
 0x39f   :  { %v458_v38 = vadd.f32 %v479_v34, %v457_v37 }
 0x3a0   :  { %467 = vst [vmem:[%s973_s9 + $0x8] sm:$0xff] %v463_v36 }
 0x3a1   :  { %466 = vst [vmem:[%s973_s9] sm:$0xff] %v458_v38 }
 0x3a2   :  { %472 = vsyncpa [#allocation3], 1 }
 0x3a3   :  { %473 = vsyncpa [#allocation5], 1 }

</bundles_post_ra>
